<compile_context>
chip_gen: v7x
topology: tpu7x:2x2x1
jax: 0.10.0
libtpu: 0.0.40
codegen_flags: <defaults>
</compile_context>

<pallas_src>
import jax
import jax.numpy as jnp
from jax.experimental import pallas as pl
from jax.experimental.pallas import tpu as pltpu


_SMOOTH = 1e-6


def _make_kernel(rows, block_r, group_rows, n_sub, C, tiles_half):
    """Grid = (N, 2 halves, tiles_half)."""

    def kernel(x_ref, y_ref, inter_ref, union_ref, inter_acc, union_acc):
        h = pl.program_id(1)
        r = pl.program_id(2)

        @pl.when(r == 0)
        def _init():
            inter_acc[...] = jnp.zeros_like(inter_acc)
            union_acc[...] = jnp.zeros_like(union_acc)

        # Global row-tile index handled by this (half, step); number of valid
        # rows in this tile (0 for the padded tile of an odd tile count).
        tile = h * tiles_half + r
        row_start = tile * block_r
        valid = jnp.clip(rows - row_start, 0, block_r)

        x = x_ref[0]                      # (block_r, C) f32
        y = y_ref[0]

        def accumulate(xv, yv):
            # torch .int() truncates toward zero; values are in [0, 255].
            a = (xv * 255.0).astype(jnp.int32)
            b = (yv * 255.0).astype(jnp.int32)
            # Layout-preserving split at the sublane boundary; axis-0 sum is
            # plain vreg adds (VPU), no cross-lane work per tile.
            inter_acc[...] += (a & b).reshape(n_sub, group_rows, C).sum(axis=0)
            union_acc[...] += (a | b).reshape(n_sub, group_rows, C).sum(axis=0)

        @pl.when(valid >= block_r)        # full tile: no masking needed
        def _full():
            accumulate(x, y)

        @pl.when(valid < block_r)         # ragged / empty edge tile: mask rows
        def _ragged():
            keep = jax.lax.broadcasted_iota(jnp.int32, (block_r, C), 0) < valid
            accumulate(jnp.where(keep, x, 0.0), jnp.where(keep, y, 0.0))

        @pl.when(r == tiles_half - 1)
        def _finalize():
            # Final reduce in f32 (int32 total could overflow for huge images).
            inter = jnp.sum(inter_acc[...].astype(jnp.float32))
            union = jnp.sum(union_acc[...].astype(jnp.float32))
            inter_ref[...] = jnp.full(inter_ref.shape, inter, dtype=jnp.float32)
            union_ref[...] = jnp.full(union_ref.shape, union, dtype=jnp.float32)

    return kernel


def mean_iou(outputs, labels, *, target_block_elems=1 << 20):
    """outputs, labels: (N, H, W) float arrays in [0, 1]. Returns scalar f32."""
    assert outputs.shape == labels.shape and outputs.ndim == 3
    N, H, W = outputs.shape
    HW = H * W

    x = jnp.asarray(outputs, jnp.float32)
    y = jnp.asarray(labels, jnp.float32)

    if HW % 128 == 0:
        # Copy-free lane-dense slab: prefer the widest C that still gives >= 8
        # rows (full sublane utilization); fall back to 128 lanes.
        C = 128
        for cand in (512, 256):
            if HW % cand == 0 and HW // cand >= 8:
                C = cand
                break
        rows = HW // C
        x = x.reshape(N, rows, C)
        y = y.reshape(N, rows, C)
    else:
        # Ragged H*W: tile the native layout; last block dim == full W.
        rows, C = H, W

    # Row tile: multiple of 8 and <= rows (so only standard ragged edge blocks
    # occur); ~target_block_elems elements (~4 MiB f32) per tile per input.
    if rows < 8:
        block_r = rows                    # block == full dim (tiny inputs)
    else:
        cap = max(8, (target_block_elems // max(C, 1)) // 8 * 8)
        block_r = min((rows // 8) * 8, cap)

    group_rows = 8 if block_r % 8 == 0 else block_r
    n_sub = block_r // group_rows

    total_tiles = -(-rows // block_r)
    tiles_half = -(-total_tiles // 2)     # tiles handled by each half

    kernel = _make_kernel(rows, block_r, group_rows, n_sub, C, tiles_half)

    def in_map(n, h, r):
        # Clamp so the (possibly) extra tile of the second half stays in
        # bounds; its contribution is fully masked in the kernel.
        return (n, jnp.minimum(h * tiles_half + r, total_tiles - 1), 0)

    def out_map(n, h, r):
        return (n, h, 0, 0)

    inter_parts, union_parts = pl.pallas_call(
        kernel,
        out_shape=(
            jax.ShapeDtypeStruct((N, 2, 8, 128), jnp.float32),
            jax.ShapeDtypeStruct((N, 2, 8, 128), jnp.float32),
        ),
        grid=(N, 2, tiles_half),
        in_specs=[
            pl.BlockSpec((1, block_r, C), in_map),
            pl.BlockSpec((1, block_r, C), in_map),
        ],
        out_specs=[
            pl.BlockSpec((1, 1, 8, 128), out_map),
            pl.BlockSpec((1, 1, 8, 128), out_map),
        ],
        scratch_shapes=[
            pltpu.VMEM((group_rows, C), jnp.int32),
            pltpu.VMEM((group_rows, C), jnp.int32),
        ],
        compiler_params=pltpu.CompilerParams(
            dimension_semantics=("parallel", "parallel", "arbitrary"),
            vmem_limit_bytes=32 * 1024 * 1024,
        ),
    )(x, y)

    # Combine the per-half raw partials and apply IoU / threshold / mean in
    # plain JAX (keeps both grid parallel axes free of the epilogue).
    inter = inter_parts[:, :, 0, 0].sum(axis=1)
    union = union_parts[:, :, 0, 0].sum(axis=1)
    iou = (inter + _SMOOTH) / (union + _SMOOTH)
    thr = jnp.ceil(jnp.clip(20.0 * (iou - 0.5), 0.0, 10.0)) / 10.0
    return jnp.mean(thr)


def _mean_iou_ref(outputs, labels):
    """Pure-JAX reference mirroring the PyTorch forward."""
    a = (outputs * 255.0).astype(jnp.int32)
    b = (labels * 255.0).astype(jnp.int32)
    inter = jnp.sum((a & b).astype(jnp.float32), axis=(1, 2))
    union = jnp.sum((a | b).astype(jnp.float32), axis=(1, 2))
    iou = (inter + _SMOOTH) / (union + _SMOOTH)
    thr = jnp.ceil(jnp.clip(20.0 * (iou - 0.5), 0.0, 10.0)) / 10.0
    return jnp.mean(thr)


if __name__ == "__main__":
    key = jax.random.PRNGKey(0)
    k1, k2 = jax.random.split(key)
    N, H, W = 2, 16, 16
    # predictions in [0,1], labels as binary masks (typical segmentation use)
    outputs = jax.random.uniform(k1, (N, H, W), dtype=jnp.float32)
    labels = (jax.random.uniform(k2, (N, H, W)) > 0.5).astype(jnp.float32)

    result = mean_iou(outputs, labels)
    jax.block_until_ready(result)
    ref = _mean_iou_ref(outputs, labels)
    assert jnp.allclose(result, ref, atol=1e-6), (result, ref)

    # Extra small-shape checks: multiple row tiles (both halves carry real
    # data) and a ragged last row tile exercising the in-kernel mask.
    for (n2, h2, w2) in [(2, 64, 128), (3, 40, 128)]:
        ka, kb = jax.random.split(jax.random.PRNGKey(n2 * 7 + h2))
        o2 = jax.random.uniform(ka, (n2, h2, w2), dtype=jnp.float32)
        l2 = (jax.random.uniform(kb, (n2, h2, w2)) > 0.5).astype(jnp.float32)
        r2 = mean_iou(o2, l2, target_block_elems=4096)
        jax.block_until_ready(r2)
        assert jnp.allclose(r2, _mean_iou_ref(o2, l2), atol=1e-6), (n2, h2, w2)

    print("KERNEL_OK")
</pallas_src>

<mosaic_0001>
module attributes {stable_mosaic.version = 11 : i64} {
  func.func @kernel(%arg0: i32, %arg1: i32, %arg2: i32, %arg3: memref<1x2x128xf32, #tpu.memory_space<vmem>>, %arg4: memref<1x2x128xf32, #tpu.memory_space<vmem>>, %arg5: memref<1x1x8x128xf32, #tpu.memory_space<vmem>>, %arg6: memref<1x1x8x128xf32, #tpu.memory_space<vmem>>, %arg7: memref<2x128xi32, #tpu.memory_space<vmem>>, %arg8: memref<2x128xi32, #tpu.memory_space<vmem>>) attributes {dimension_semantics = [#tpu.dimension_semantics<parallel>, #tpu.dimension_semantics<parallel>, #tpu.dimension_semantics<arbitrary>], iteration_bounds = array<i64: 2, 2, 1>, scalar_prefetch = 0 : i64, scratch_operands = 2 : i64, tpu.core_type = #tpu.core_type<tc>, window_params = [{transform_indices = @transform_0, window_bounds = array<i64: 1, 2, 128>}, {transform_indices = @transform_1, window_bounds = array<i64: 1, 2, 128>}, {transform_indices = @transform_2, window_bounds = array<i64: 1, 1, 8, 128>}, {transform_indices = @transform_3, window_bounds = array<i64: 1, 1, 8, 128>}]} {
    %c0_i32 = arith.constant 0 : i32
    %0 = arith.cmpi eq, %arg2, %c0_i32 : i32
    %1 = arith.extui %0 : i1 to i32
    %c0_i32_0 = arith.constant 0 : i32
    %2 = arith.cmpi ne, %1, %c0_i32_0 : i32
    scf.if %2 {
      %c0_i32_15 = arith.constant 0 : i32
      %22 = vector.broadcast %c0_i32_15 : i32 to vector<2x128xi32>
      %c0_16 = arith.constant 0 : index
      %c0_17 = arith.constant 0 : index
      %23 = vector.load %arg7[%c0_16, %c0_17] : memref<2x128xi32, #tpu.memory_space<vmem>>, vector<2x128xi32>
      tpu.vector_store %arg7[%c0_16, %c0_17], %22 {strides = array<i32>} : memref<2x128xi32, #tpu.memory_space<vmem>>, vector<2x128xi32>,
      %c0_i32_18 = arith.constant 0 : i32
      %24 = vector.broadcast %c0_i32_18 : i32 to vector<2x128xi32>
      %c0_19 = arith.constant 0 : index
      %c0_20 = arith.constant 0 : index
      %25 = vector.load %arg8[%c0_19, %c0_20] : memref<2x128xi32, #tpu.memory_space<vmem>>, vector<2x128xi32>
      tpu.vector_store %arg8[%c0_19, %c0_20], %24 {strides = array<i32>} : memref<2x128xi32, #tpu.memory_space<vmem>>, vector<2x128xi32>,
    } else {
    }
    %c1_i32 = arith.constant 1 : i32
    %3 = arith.muli %arg1, %c1_i32 : i32
    %4 = arith.addi %3, %arg2 : i32
    %c2_i32 = arith.constant 2 : i32
    %5 = arith.muli %4, %c2_i32 : i32
    %c2_i32_1 = arith.constant 2 : i32
    %6 = arith.subi %c2_i32_1, %5 : i32
    %c0_i32_2 = arith.constant 0 : i32
    %c2_i32_3 = arith.constant 2 : i32
    %7 = arith.maxsi %c0_i32_2, %6 : i32
    %8 = arith.minsi %c2_i32_3, %7 : i32
    %c0 = arith.constant 0 : index
    %c0_4 = arith.constant 0 : index
    %c0_5 = arith.constant 0 : index
    %9 = vector.load %arg3[%c0, %c0_4, %c0_5] : memref<1x2x128xf32, #tpu.memory_space<vmem>>, vector<1x2x128xf32>
    %10 = vector.shape_cast %9 : vector<1x2x128xf32> to vector<2x128xf32>
    %c0_6 = arith.constant 0 : index
    %c0_7 = arith.constant 0 : index
    %c0_8 = arith.constant 0 : index
    %11 = vector.load %arg4[%c0_6, %c0_7, %c0_8] : memref<1x2x128xf32, #tpu.memory_space<vmem>>, vector<1x2x128xf32>
    %12 = vector.shape_cast %11 : vector<1x2x128xf32> to vector<2x128xf32>
    %c2_i32_9 = arith.constant 2 : i32
    %13 = arith.cmpi sge, %8, %c2_i32_9 : i32
    %14 = arith.extui %13 : i1 to i32
    %c0_i32_10 = arith.constant 0 : i32
    %15 = arith.cmpi ne, %14, %c0_i32_10 : i32
    scf.if %15 {
      %cst = arith.constant 2.550000e+02 : f32
      %22 = vector.broadcast %cst : f32 to vector<2x128xf32>
      %23 = arith.mulf %10, %22 : vector<2x128xf32>
      %24 = arith.fptosi %23 : vector<2x128xf32> to vector<2x128xi32>
      %cst_15 = arith.constant 2.550000e+02 : f32
      %25 = vector.broadcast %cst_15 : f32 to vector<2x128xf32>
      %26 = arith.mulf %12, %25 : vector<2x128xf32>
      %27 = arith.fptosi %26 : vector<2x128xf32> to vector<2x128xi32>
      %c0_16 = arith.constant 0 : index
      %c0_17 = arith.constant 0 : index
      %28 = vector.load %arg7[%c0_16, %c0_17] : memref<2x128xi32, #tpu.memory_space<vmem>>, vector<2x128xi32>
      %29 = arith.andi %24, %27 : vector<2x128xi32>
      %30 = vector.shape_cast %29 : vector<2x128xi32> to vector<1x2x128xi32>
      %cst_18 = arith.constant dense<0> : vector<2x128xi32>
      %31 = vector.multi_reduction <add>, %30, %cst_18 [0] : vector<1x2x128xi32> to vector<2x128xi32>
      %32 = arith.addi %28, %31 : vector<2x128xi32>
      %c0_19 = arith.constant 0 : index
      %c0_20 = arith.constant 0 : index
      %33 = vector.load %arg7[%c0_19, %c0_20] : memref<2x128xi32, #tpu.memory_space<vmem>>, vector<2x128xi32>
      tpu.vector_store %arg7[%c0_19, %c0_20], %32 {strides = array<i32>} : memref<2x128xi32, #tpu.memory_space<vmem>>, vector<2x128xi32>,
      %c0_21 = arith.constant 0 : index
      %c0_22 = arith.constant 0 : index
      %34 = vector.load %arg8[%c0_21, %c0_22] : memref<2x128xi32, #tpu.memory_space<vmem>>, vector<2x128xi32>
      %35 = arith.ori %24, %27 : vector<2x128xi32>
      %36 = vector.shape_cast %35 : vector<2x128xi32> to vector<1x2x128xi32>
      %cst_23 = arith.constant dense<0> : vector<2x128xi32>
      %37 = vector.multi_reduction <add>, %36, %cst_23 [0] : vector<1x2x128xi32> to vector<2x128xi32>
      %38 = arith.addi %34, %37 : vector<2x128xi32>
      %c0_24 = arith.constant 0 : index
      %c0_25 = arith.constant 0 : index
      %39 = vector.load %arg8[%c0_24, %c0_25] : memref<2x128xi32, #tpu.memory_space<vmem>>, vector<2x128xi32>
      tpu.vector_store %arg8[%c0_24, %c0_25], %38 {strides = array<i32>} : memref<2x128xi32, #tpu.memory_space<vmem>>, vector<2x128xi32>,
    } else {
    }
    %c2_i32_11 = arith.constant 2 : i32
    %16 = arith.cmpi slt, %8, %c2_i32_11 : i32
    %17 = arith.extui %16 : i1 to i32
    %c0_i32_12 = arith.constant 0 : i32
    %18 = arith.cmpi ne, %17, %c0_i32_12 : i32
    scf.if %18 {
      %22 = tpu.iota {dimensions = array<i32: 0>} : vector<2x128xi32>
      %23 = vector.broadcast %8 : i32 to vector<2x128xi32>
      %24 = arith.cmpi slt, %22, %23 : vector<2x128xi32>
      %cst = arith.constant 0.000000e+00 : f32
      %25 = vector.broadcast %cst : f32 to vector<2x128xf32>
      %26 = arith.select %24, %10, %25 : vector<2x128xi1>, vector<2x128xf32>
      %cst_15 = arith.constant 0.000000e+00 : f32
      %27 = vector.broadcast %cst_15 : f32 to vector<2x128xf32>
      %28 = arith.select %24, %12, %27 : vector<2x128xi1>, vector<2x128xf32>
      %cst_16 = arith.constant 2.550000e+02 : f32
      %29 = vector.broadcast %cst_16 : f32 to vector<2x128xf32>
      %30 = arith.mulf %26, %29 : vector<2x128xf32>
      %31 = arith.fptosi %30 : vector<2x128xf32> to vector<2x128xi32>
      %cst_17 = arith.constant 2.550000e+02 : f32
      %32 = vector.broadcast %cst_17 : f32 to vector<2x128xf32>
      %33 = arith.mulf %28, %32 : vector<2x128xf32>
      %34 = arith.fptosi %33 : vector<2x128xf32> to vector<2x128xi32>
      %c0_18 = arith.constant 0 : index
      %c0_19 = arith.constant 0 : index
      %35 = vector.load %arg7[%c0_18, %c0_19] : memref<2x128xi32, #tpu.memory_space<vmem>>, vector<2x128xi32>
      %36 = arith.andi %31, %34 : vector<2x128xi32>
      %37 = vector.shape_cast %36 : vector<2x128xi32> to vector<1x2x128xi32>
      %cst_20 = arith.constant dense<0> : vector<2x128xi32>
      %38 = vector.multi_reduction <add>, %37, %cst_20 [0] : vector<1x2x128xi32> to vector<2x128xi32>
      %39 = arith.addi %35, %38 : vector<2x128xi32>
      %c0_21 = arith.constant 0 : index
      %c0_22 = arith.constant 0 : index
      %40 = vector.load %arg7[%c0_21, %c0_22] : memref<2x128xi32, #tpu.memory_space<vmem>>, vector<2x128xi32>
      tpu.vector_store %arg7[%c0_21, %c0_22], %39 {strides = array<i32>} : memref<2x128xi32, #tpu.memory_space<vmem>>, vector<2x128xi32>,
      %c0_23 = arith.constant 0 : index
      %c0_24 = arith.constant 0 : index
      %41 = vector.load %arg8[%c0_23, %c0_24] : memref<2x128xi32, #tpu.memory_space<vmem>>, vector<2x128xi32>
      %42 = arith.ori %31, %34 : vector<2x128xi32>
      %43 = vector.shape_cast %42 : vector<2x128xi32> to vector<1x2x128xi32>
      %cst_25 = arith.constant dense<0> : vector<2x128xi32>
      %44 = vector.multi_reduction <add>, %43, %cst_25 [0] : vector<1x2x128xi32> to vector<2x128xi32>
      %45 = arith.addi %41, %44 : vector<2x128xi32>
      %c0_26 = arith.constant 0 : index
      %c0_27 = arith.constant 0 : index
      %46 = vector.load %arg8[%c0_26, %c0_27] : memref<2x128xi32, #tpu.memory_space<vmem>>, vector<2x128xi32>
      tpu.vector_store %arg8[%c0_26, %c0_27], %45 {strides = array<i32>} : memref<2x128xi32, #tpu.memory_space<vmem>>, vector<2x128xi32>,
    } else {
    }
    %c0_i32_13 = arith.constant 0 : i32
    %19 = arith.cmpi eq, %arg2, %c0_i32_13 : i32
    %20 = arith.extui %19 : i1 to i32
    %c0_i32_14 = arith.constant 0 : i32
    %21 = arith.cmpi ne, %20, %c0_i32_14 : i32
    scf.if %21 {
      %c0_15 = arith.constant 0 : index
      %c0_16 = arith.constant 0 : index
      %22 = vector.load %arg7[%c0_15, %c0_16] : memref<2x128xi32, #tpu.memory_space<vmem>>, vector<2x128xi32>
      %23 = arith.sitofp %22 : vector<2x128xi32> to vector<2x128xf32>
      %24 = vector.shape_cast %23 : vector<2x128xf32> to vector<1x2x128xf32>
      %cst = arith.constant dense<0.000000e+00> : vector<1xf32>
      %25 = vector.multi_reduction <add>, %24, %cst [1, 2] : vector<1x2x128xf32> to vector<1xf32>
      %26 = vector.shape_cast %25 : vector<1xf32> to vector<1x1x1xf32>
      %27 = vector.extract %26[0, 0, 0] : f32 from vector<1x1x1xf32>
      %c0_17 = arith.constant 0 : index
      %c0_18 = arith.constant 0 : index
      %28 = vector.load %arg8[%c0_17, %c0_18] : memref<2x128xi32, #tpu.memory_space<vmem>>, vector<2x128xi32>
      %29 = arith.sitofp %28 : vector<2x128xi32> to vector<2x128xf32>
      %30 = vector.shape_cast %29 : vector<2x128xf32> to vector<1x2x128xf32>
      %cst_19 = arith.constant dense<0.000000e+00> : vector<1xf32>
      %31 = vector.multi_reduction <add>, %30, %cst_19 [1, 2] : vector<1x2x128xf32> to vector<1xf32>
      %32 = vector.shape_cast %31 : vector<1xf32> to vector<1x1x1xf32>
      %33 = vector.extract %32[0, 0, 0] : f32 from vector<1x1x1xf32>
      %34 = vector.broadcast %27 : f32 to vector<1x1x8x128xf32>
      %c0_20 = arith.constant 0 : index
      %c0_21 = arith.constant 0 : index
      %c0_22 = arith.constant 0 : index
      %c0_23 = arith.constant 0 : index
      %35 = vector.load %arg5[%c0_20, %c0_21, %c0_22, %c0_23] : memref<1x1x8x128xf32, #tpu.memory_space<vmem>>, vector<1x1x8x128xf32>
      tpu.vector_store %arg5[%c0_20, %c0_21, %c0_22, %c0_23], %34 {strides = array<i32>} : memref<1x1x8x128xf32, #tpu.memory_space<vmem>>, vector<1x1x8x128xf32>,
      %36 = vector.broadcast %33 : f32 to vector<1x1x8x128xf32>
      %c0_24 = arith.constant 0 : index
      %c0_25 = arith.constant 0 : index
      %c0_26 = arith.constant 0 : index
      %c0_27 = arith.constant 0 : index
      %37 = vector.load %arg6[%c0_24, %c0_25, %c0_26, %c0_27] : memref<1x1x8x128xf32, #tpu.memory_space<vmem>>, vector<1x1x8x128xf32>
      tpu.vector_store %arg6[%c0_24, %c0_25, %c0_26, %c0_27], %36 {strides = array<i32>} : memref<1x1x8x128xf32, #tpu.memory_space<vmem>>, vector<1x1x8x128xf32>,
    } else {
    }
    return
  }
  func.func @transform_0(%arg0: i32, %arg1: i32, %arg2: i32) -> (i32, i32, i32) {
    %c1_i32 = arith.constant 1 : i32
    %0 = arith.muli %arg1, %c1_i32 : i32
    %1 = arith.addi %0, %arg2 : i32
    %c0_i32 = arith.constant 0 : i32
    %2 = arith.minsi %1, %c0_i32 : i32
    %c0_i32_0 = arith.constant 0 : i32
    %c0_i32_1 = arith.constant 0 : i32
    return %arg0, %2, %c0_i32_0 : i32, i32, i32
  }
  func.func @transform_1(%arg0: i32, %arg1: i32, %arg2: i32) -> (i32, i32, i32) {
    %c1_i32 = arith.constant 1 : i32
    %0 = arith.muli %arg1, %c1_i32 : i32
    %1 = arith.addi %0, %arg2 : i32
    %c0_i32 = arith.constant 0 : i32
    %2 = arith.minsi %1, %c0_i32 : i32
    %c0_i32_0 = arith.constant 0 : i32
    %c0_i32_1 = arith.constant 0 : i32
    return %arg0, %2, %c0_i32_0 : i32, i32, i32
  }
  func.func @transform_2(%arg0: i32, %arg1: i32, %arg2: i32) -> (i32, i32, i32, i32) {
    %c0_i32 = arith.constant 0 : i32
    %c0_i32_0 = arith.constant 0 : i32
    %c0_i32_1 = arith.constant 0 : i32
    return %arg0, %arg1, %c0_i32, %c0_i32_0 : i32, i32, i32, i32
  }
  func.func @transform_3(%arg0: i32, %arg1: i32, %arg2: i32) -> (i32, i32, i32, i32) {
    %c0_i32 = arith.constant 0 : i32
    %c0_i32_0 = arith.constant 0 : i32
    %c0_i32_1 = arith.constant 0 : i32
    return %arg0, %arg1, %c0_i32, %c0_i32_0 : i32, i32, i32, i32
  }
}

</mosaic_0001>

<bundles_post_ra>
// kernel: tpu_custom_call.1
= control target key start
LH: loop header
LB: loop body
LE: loop exit
PB: predicated region body
PF: predicated region fallthrough
CT: control target
= control target key end

     0   :  { %s1263_s0 = inlined_call_operand.hbm [shape: f32[2,2,128], index: 0, kind: input, shape index: {}]   ;;  %s1264_s1 = inlined_call_operand.hbm [shape: f32[2,2,128], index: 1, kind: input, shape index: {}]   ;;  %s1265_s2 = inlined_call_operand.hbm [shape: f32[2,2,8,128], index: 2, kind: output, shape index: {0}]   ;;  %s1266_s3 = inlined_call_operand.hbm [shape: f32[2,2,8,128], index: 3, kind: output, shape index: {1}]  }
   0x1   :  { %1274 = sst [smem:[#allocation19_spill]] %s1263_s0 }
   0x2   :  { %9 = vsyncpa [#allocation5], 0 }
   0x3   :  { %11 = vsyncpa [#allocation5 + $0x1], 0 }
   0x4   :  { %12 = vsyncpa [#allocation8], 0 }
   0x5   :  { %14 = vsyncpa [#allocation8 + $0x1], 0 }
   0x6   :  { %15 = vsyncpa [#allocation6], 0 }
   0x7   :  { %17 = vsyncpa [#allocation6 + $0x1], 0 }
   0x8   :  { %18 = vsyncpa [#allocation11], 0 }
   0x9   :  { %20 = vsyncpa [#allocation11 + $0x1], 0  ;;  %s954_s12 = smov 0   ;;  %s956_s13 = smov 0  }
   0xa   :  { %s958_s14 = smov 0   ;;  %s960_s15 = smov 0  }
   0xb   :  { %s962_s16 = smov 0   ;;  %s964_s17 = smov 0  }
   0xc   :  { %s966_s18 = smov 0   ;;  %s968_s19 = smov 0  }
   0xd   :  { %s970_s20 = smov 0   ;;  %s972_s21 = smov 0  }
   0xe   :  { %s974_s22 = smov 0  }
   0xf LB: > { %1275 = sst [smem:[#allocation16_spill]] %s923_s21  ;;  %s553_s23 = sadd.s32 4294967295, %s927_s22   ;;  %s927_s22 = sphi %s974_s22, %s26_s22   ;;  %s923_s21 = sphi %s972_s21, %s1295_s21   ;;  %s919_s20 = sphi %s970_s20, %s1303_s20   ;;  %s915_s19 = sphi %s968_s19, %s1293_s19   ;;  %s911_s18 = sphi %s966_s18, %s1302_s18   ;;  %s907_s17 = sphi %s964_s17, %s1301_s17   ;;  %s903_s16 = sphi %s962_s16, %s1300_s16   ;;  %s899_s15 = sphi %s960_s15, %s1299_s15   ;;  %s895_s14 = sphi %s958_s14, %s1298_s14   ;;  %s891_s13 = sphi %s956_s13, %s1297_s13   ;;  %s887_s12 = sphi %s954_s12, %s1296_s12  }
  0x10   : > { %s554_s24 = sadd.s32 4294967294, %s927_s22   ;;  %s41_s25 = sadd.s32 1, %s919_s20 }
  0x11   : > { %s45_s26 = sadd.s32 1, %s923_s21  ;;  %p43_p0 = scmp.ge.s32.totalorder %s41_s25, 2 }
  0x12   : > { %s60_s27 = sadd.s32 1, %s907_s17  ;;  %p67_p1 = scmp.ne.s32.totalorder %s907_s17, %s903_s16 }
  0x13   : > { %s1305_s25 = smov (%p43_p0, %s41_s25), 0  ;;  %s1307_s26 = smov (!%p43_p0, %s45_s26), %s923_s21 }
  0x14   : > { %1276 = sst [smem:[#allocation17_spill]] %s1305_s25  ;;  %p47_p2 = scmp.ge.s32.totalorder %s1307_s26, 2 }
  0x15   : > { %p68_p3 = scmp.eq.s32.totalorder %s927_s22, 0  ;;  %p73_p4 = scmp.ne.s32.totalorder %s903_s16, %s899_s15 }
  0x16   : > { %s1309_s26 = smov (%p47_p2, %s1307_s26), 0  ;;  %p74_p6 = scmp.eq.s32.totalorder %s553_s23, 0 }
  0x17   : > { %1277 = sst [smem:[#allocation18_spill]] %s1309_s26  ;;  %s55_s28 = ssub.s32 %s923_s21, %s1309_s26 }
  0x18   : > { %p1023_p5 = por %p68_p3, %p67_p1  ;;  %s118_s30 = ssub.s32 %s919_s20, %s1305_s25 }
  0x19   : > { %p58_p7 = scmp.eq.s32.totalorder %s55_s28, 0  ;;  %p1029_p8 = por %p74_p6, %p73_p4 }
  0x1a   : > { %s119_s5 = sor.u32 %s118_s30, %s55_s28  ;;  %s122_s6 = sadd.s32 1, %s895_s14 }
  0x1b   : > { %s1279_s4 = scalar_select %p1029_p8, 1, 0 }
  0x1c   : > { %s1035_s7 = scalar_select %p58_p7, %s907_s17, %s60_s27  }
  0x1d   : > { %p120_p9 = scmp.eq.s32.totalorder %s119_s5, 0  ;;  %p132_p10 = scmp.ne.s32.totalorder %s895_s14, %s891_s13 }
  0x1e   : > { %p133_p11 = scmp.eq.s32.totalorder %s553_s23, 3  ;;  %p138_p12 = scmp.ne.s32.totalorder %s891_s13, %s887_s12 }
  0x1f   : > { %s1042_s8 = scalar_select %p120_p9, %s895_s14, %s122_s6  }
  0x20   : > { %p1044_p13 = por %p133_p11, %p132_p10  ;;  %p139_p0 = scmp.eq.s32.totalorder %s554_s24, 3 }
  0x21   : > { %p618_p1 = scmp.lt.s32.totalorder %s927_s22, 4  ;;  %s1054_s11 = sand.u32 1, %s907_s17  }
  0x22   : > { %s1280_s9 = scalar_select %p1044_p13, 1, 0 }
  0x23   : > { %p1049_p2 = por %p139_p0, %p138_p12  ;;  %s1267_s15 = sshll.u32 %s1054_s11, 1 }
  0x24   : > { %s1268_s23 = sshll.u32 %s923_s21, 5  ;;  %s191_s27 = scalar_lea.vmem [#allocation4], %s1267_s15 }
  0x25   : > { %s1281_s10 = scalar_select %p1049_p2, 1, 0 }
  0x26   : > { %s202_s28 = sshll.u32 %s191_s27, 4  ;;  %s1282_s0 = sld [smem:[#allocation19_spill]]  ;;  %s1067_s28 = int_to_ptr.vmem [resolvable:$true] %s202_s28 }
  0x27   : > { %p1071_p3 = pnand %p618_p1, %p1023_p5  ;;  %s188_s27 = scalar_lea.sflag [#allocation5], %s1054_s11 }
  0x29   : > { %p711_p9 = pneg %p1071_p3 }
  0x2c   : > { %s1065_s24 = scalar_lea.hbm %s1282_s0, %s1268_s23  ;;  %s714_s29 = scalar_lea.hbm %s1282_s0, 64 }
  0x2d   : > { %s709_s15 = scalar_lea.hbm %s1065_s24, 32  ;;  %p715_p5 = scmp.lt.u32.totalorder %s1065_s24, %s1282_s0 }
  0x2e   : > { %p710_p7 = scmp.ne.s32.totalorder %s1065_s24, %s709_s15  ;;  %p716_p12 = scmp.lt.u32.totalorder %s714_s29, %s709_s15 }
  0x2f   : > { %p718_p1 = scmp.lt.u32.totalorder %s709_s15, %s1065_s24 }
  0x30   : > { %p712_p10 = pnand %p711_p9, %p710_p7  ;;  %p717_p0 = por %p716_p12, %p715_p5 }
  0x32   : > { %p713_p11 = pneg %p712_p10  ;;  %p719_p4 = por %p718_p1, %p717_p0 }
  0x34   : > { %p720_p6 = pnand %p719_p4, %p713_p11 }
  0x36   : > { %723 = shalt.err (!%p720_p6)
}
  0x37   : > { %s724_s25 = scalar_lea.vmem %s1067_s28, 32  ;;  %s929_s30 = smov [#allocation4]  }
  0x38   : > { %p725_p7 = scmp.ne.s32.totalorder %s1067_s28, %s724_s25  ;;  %s729_s5 = sshll.u32 %s929_s30, 4  ;;  %s730_s5 = int_to_ptr.vmem [resolvable:$false] %s729_s5 }
  0x39   : > { %s731_s26 = scalar_lea.vmem %s730_s5, 64  ;;  %p732_p13 = scmp.lt.s32.totalorder %s1067_s28, %s730_s5 }
  0x3a   : > { %p727_p10 = pnand %p725_p7, %p711_p9  ;;  %p733_p5 = scmp.lt.s32.totalorder %s731_s26, %s724_s25 }
  0x3c   : > { %p728_p2 = pneg %p727_p10  ;;  %p734_p12 = por %p733_p5, %p732_p13 }
  0x3e   : > { %p735_p0 = pnand %p734_p12, %p728_p2 }
  0x40   : > { %738 = shalt.err (!%p735_p0)
}
  0x41   : > { %607 = dma.hbm_to_vmem [thread:$0]  (!%p1071_p3), %s1065_s24, 32, %s1067_s28, %s188_s27  }
  0x42   : > { %p1284_p4 = scmp.lt.s32.totalorder %s927_s22, 5  ;;  %p1285_p6 = scmp.ge.s32.totalorder %s927_s22, 1 }
  0x43   : > { %s1287_s25 = sshll.u32 %s923_s21, 5  ;;  %s1288_s5 = sshll.u32 %s1054_s11, 1 }
  0x44   : > { %p1107_p11 = pnand %p1285_p6, %p1284_p4  ;;  %s1116_s30 = scalar_lea.hbm %s1264_s1, %s1287_s25 }
  0x45   : > { %s213_s26 = scalar_lea.vmem [#allocation7], %s1288_s5  ;;  %s210_s28 = scalar_lea.sflag [#allocation8], %s1054_s11 }
  0x46   : > { %s1286_s15 = scalar_select %p1107_p11, 1, 0 }
  0x47   : > { %s224_s0 = sshll.u32 %s213_s26, 4  ;;  %s739_s24 = scalar_lea.hbm %s1116_s30, 32  ;;  %s225_s0 = int_to_ptr.vmem [resolvable:$true] %s224_s0 }
  0x48   : > { %p740_p13 = scmp.ne.s32.totalorder %s1116_s30, %s739_s24  ;;  %s744_s25 = scalar_lea.hbm %s1264_s1, 64 }
  0x49   : > { %p745_p7 = scmp.lt.u32.totalorder %s1116_s30, %s1264_s1  ;;  %p746_p10 = scmp.lt.u32.totalorder %s744_s25, %s739_s24 }
  0x4a   : > { %p742_p2 = pnand %p740_p13, %p711_p9  ;;  %p748_p12 = scmp.lt.u32.totalorder %s739_s24, %s1116_s30 }
  0x4b   : > { %p747_p5 = por %p746_p10, %p745_p7 }
  0x4c   : > { %p743_p1 = pneg %p742_p2 }
  0x4d   : > { %p749_p0 = por %p748_p12, %p747_p5 }
  0x4f   : > { %p750_p4 = pnand %p749_p0, %p743_p1 }
  0x51   : > { %753 = shalt.err (!%p750_p4)
}
  0x52   : > { %s754_s11 = scalar_lea.vmem %s225_s0, 32  ;;  %s930_s5 = smov [#allocation7]  }
  0x53   : > { %p755_p6 = scmp.ne.s32.totalorder %s225_s0, %s754_s11  ;;  %s759_s21 = sshll.u32 %s930_s5, 4  ;;  %s760_s21 = int_to_ptr.vmem [resolvable:$false] %s759_s21 }
  0x54   : > { %s761_s26 = scalar_lea.vmem %s760_s21, 64  ;;  %p762_p8 = scmp.lt.s32.totalorder %s225_s0, %s760_s21 }
  0x55   : > { %p757_p13 = pnand %p755_p6, %p711_p9  ;;  %p763_p11 = scmp.lt.s32.totalorder %s761_s26, %s754_s11 }
  0x57   : > { %p758_p2 = pneg %p757_p13  ;;  %p764_p7 = por %p763_p11, %p762_p8 }
  0x59   : > { %p765_p10 = pnand %p764_p7, %p758_p2 }
  0x5b   : > { %768 = shalt.err (!%p765_p10)
}
  0x5c   : > { %610 = dma.hbm_to_vmem [thread:$0]  (!%p1071_p3), %s1116_s30, 32, %s225_s0, %s210_s28  }
  0x5d   : > { %p1289_p1 = scmp.ne.s32.totalorder %s1286_s15, 0 }
  0x5e   : > { %s235_s24 = sand.u32 (!%p1289_p1), 1, %s903_s16   ;;  %p1290_p9 = scmp.ne.s32.totalorder (!%p1289_p1), %s1279_s4, 0 }
  0x5f   : > { %233 = sbr.rel (%p1289_p1) target bundleno = 393 (0x189), region = 28  ;;  %s562_s27 = sshll.u32 (!%p1289_p1), %s235_s24, 1 }
  0x60   : > { %s236_s25 = scalar_lea.sflag (!%p1289_p1), [#allocation5], %s235_s24  ;;  %s239_s23 = scalar_lea.vmem (!%p1289_p1), [#allocation4], %s562_s27 }
  0x66   : > { %870 = dma.done.wait (%p1290_p9), %s236_s25, 32  }
  0x67   : > { %872 = vsyncadd (%p1290_p9), %s236_s25, 4294967264  ;;  %s245_s29 = scalar_lea.sflag [#allocation8], %s235_s24  ;;  %s248_s11 = scalar_lea.vmem [#allocation7], %s562_s27 }
  0x68   : > { %874 = dma.done.wait (%p1290_p9), %s245_s29, 32  }
  0x69   : > { %876 = vsyncadd (%p1290_p9), %s245_s29, 4294967264  ;;  %s1152_s0 = sand.u32 1, %s891_s13   ;;  %s566_s6 = sshll.u32 %s911_s18, 1  ;;  %v931_v0 = vmov 0   ;;  %v300_v1 = vld [vmem:[%s239_s23] sm:$0x3] }
  0x6a   : > { %s564_s15 = sshll.u32 %s1152_s0, 3  ;;  %291 = vst [vmem:[#allocation2] sm:$0x3] %v931_v0  ;;  %292 = vst [vmem:[#allocation3] sm:$0x3] %v931_v0  ;;  %s295_s30 = ssub.s32 2, %s566_s6 }
  0x6b   : > { %p296_p8 = scmp.gt.s32.totalorder %s295_s30, 0  ;;  %p567_p3 = scmp.lt.s32.totalorder %s295_s30, 2  ;;  %v301_v2 = vld [vmem:[%s248_s11] sm:$0x3] }
  0x6c   : > { %s1156_s28 = scalar_lea.vmem [#allocation9], %s564_s15  ;;  %s1158_s4 = scalar_lea.vmem [#allocation10], %s564_s15 }
  0x6d   : > { %s1311_s30 = smov (!%p296_p8, %s295_s30), 0 }
  0x6e   : > { %s1313_s30 = smov (!%p567_p3, %s1311_s30), 2 }
  0x6f   : > { %p572_p11 = scmp.lt.s32.totalorder %s1313_s30, 2 }
  0x70   : > { %v306_v3 = vmul.f32 (!%p572_p11), 255.0, %v300_v1  ;;  %v308_v4 = vmul.f32 (!%p572_p11), 255.0, %v301_v2 }
  0x71   : > { %305 = sbr.rel (%p572_p11) target bundleno = 123 (0x7b), region = 44  ;;  %v310_v9 = vld [vmem:[#allocation2] sm:$0x3] (!%p572_p11)  ;;  %v314_v10 = vld [vmem:[#allocation3] sm:$0x3] (!%p572_p11) }
  0x72   : > { %v584_v5 = vtrunc.f32 (!%p572_p11), %v306_v3  ;;  %v586_v6 = vtrunc.f32 (!%p572_p11), %v308_v4 }
  0x74   : > { %v585_v7 = vcvt.f32.s32 (!%p572_p11), %v584_v5  ;;  %v587_v8 = vcvt.f32.s32 (!%p572_p11), %v586_v6 }
  0x76   : > { %v311_v11 = vand.u32 (!%p572_p11), %v587_v8, %v585_v7  ;;  %v315_v12 = vor.u32 (!%p572_p11), %v587_v8, %v585_v7 }
  0x78   : > { %v312_v13 = vadd.s32 %v311_v11, %v310_v9  ;;  %v316_v14 = vadd.s32 %v315_v12, %v314_v10 }
  0x7a   : > { %313 = vst [vmem:[#allocation2] sm:$0x3] %v312_v13  ;;  %317 = vst [vmem:[#allocation3] sm:$0x3] %v316_v14 }
  0x7b PF: > { %p573_p5 = scmp.ge.s32.totalorder %s1313_s30, 2 }
  0x7c   : > { %v322_v15 = vlaneseq (!%p573_p5)  ;;  %v324_v16 = vstv (!%p573_p5), %s1313_s30 }
  0x7d   : > { %321 = sbr.rel (%p573_p5) target bundleno = 141 (0x8d), region = 48 }
  0x7e   : > { %v323_v17 = vshrl.u32 (!%p573_p5), %v322_v15, 7 }
  0x80   : > { %vm325_vm0 = vcmp.lt.s32.totalorder (!%p573_p5), %v323_v17, %v324_v16 }
  0x81   : > { %v326_v18 = vsel (!%p573_p5), %vm325_vm0, %v300_v1, 0.0  ;;  %v327_v19 = vsel (!%p573_p5), %vm325_vm0, %v301_v2, 0.0  ;;  %v332_v26 = vld [vmem:[#allocation2] sm:$0x3] (!%p573_p5)  ;;  %v336_v27 = vld [vmem:[#allocation3] sm:$0x3] (!%p573_p5) }
  0x82   : > { %v328_v20 = vmul.f32 (!%p573_p5), 255.0, %v326_v18  ;;  %v330_v21 = vmul.f32 (!%p573_p5), 255.0, %v327_v19 }
  0x84   : > { %v588_v22 = vtrunc.f32 %v328_v20  ;;  %v590_v23 = vtrunc.f32 %v330_v21 }
  0x86   : > { %v589_v24 = vcvt.f32.s32 %v588_v22  ;;  %v591_v25 = vcvt.f32.s32 %v590_v23 }
  0x88   : > { %v333_v28 = vand.u32 %v591_v25, %v589_v24  ;;  %v337_v29 = vor.u32 %v591_v25, %v589_v24 }
  0x8a   : > { %v334_v30 = vadd.s32 %v333_v28, %v332_v26  ;;  %v338_v31 = vadd.s32 %v337_v29, %v336_v27 }
  0x8c   : > { %335 = vst [vmem:[#allocation2] sm:$0x3] %v334_v30  ;;  %339 = vst [vmem:[#allocation3] sm:$0x3] %v338_v31 }
  0x8d PF: > { %vm345_vm1 = vcmask 1041408   ;;  %s576_s5 = sshll.u32 %s915_s19, 1  ;;  %s393_s24 = sshll.u32 %s1156_s28, 4  ;;  %s1168_s24 = int_to_ptr.vmem [resolvable:$true] %s393_s24 }
  0x8e   : > { %s389_s21 = sadd.s32 %s911_s18, %s576_s5  ;;  %s408_s11 = sshll.u32 %s1158_s4, 4  ;;  %s1201_s11 = int_to_ptr.vmem [resolvable:$true] %s408_s11 }
  0x8f   : > { %s577_s26 = sshll.u32 %s389_s21, 7  ;;  %s373_s19 = scalar_lea.sflag [#allocation6], %s1152_s0 }
  0x90   : > { %s1166_s23 = scalar_lea.hbm %s1265_s2, %s577_s26  ;;  %s1175_s18 = scalar_lea.hbm %s1266_s3, %s577_s26 }
  0x91   : > { %s769_s30 = scalar_lea.vmem %s1168_s24, 128  ;;  %p1291_p0 = scmp.ne.s32.totalorder %s1280_s9, 0 }
  0x92   : > { %p770_p12 = scmp.ne.s32.totalorder %s1168_s24, %s769_s30  ;;  %s932_s5 = smov [#allocation9]  }
  0x93   : > { %v343_v32 = vld [vmem:[#allocation2] sm:$0x3]  ;;  %v356_v33 = vld [vmem:[#allocation3] sm:$0x3]  ;;  %s773_s21 = sshll.u32 %s932_s5, 4  ;;  %s774_s21 = int_to_ptr.vmem [resolvable:$false] %s773_s21 }
  0x94   : > { %v344_v34 = vcvt.s32.f32 %v343_v32  ;;  %v357_v35 = vcvt.s32.f32 %v356_v33  ;;  %p771_p4 = pnand %p770_p12, %p1291_p0  ;;  %s775_s27 = scalar_lea.vmem %s774_s21, 256 }
  0x95   : > { %p776_p13 = scmp.lt.s32.totalorder %s1168_s24, %s774_s21  ;;  %p777_p2 = scmp.lt.s32.totalorder %s775_s27, %s769_s30 }
  0x96   : > { %v346_v36 = vsel %vm345_vm1, %v344_v34, 0.0  ;;  %v358_v37 = vsel %vm345_vm1, %v357_v35, 0.0  ;;  %p772_p6 = pneg %p771_p4 }
  0x97   : > { %347 = vadd.xlane.f32.xlu0 %v346_v36  ;;  %p778_p7 = por %p777_p2, %p776_p13 }
  0x99   : > { %p779_p10 = pnand %p778_p7, %p772_p6 }
  0x9b   : > { %359 = vadd.xlane.f32.xlu0 %v358_v37 }
 0x124   : > { %v348_v38 = vpop.xlane.xlu0 %347 }
 0x125   : > { %v349_v39 = vrot.slane %v348_v38, 4 }
 0x127   : > { %v350_v40 = vadd.f32 %v349_v39, %v348_v38 }
 0x128   : > { %v360_v41 = vpop.xlane.xlu0 %359 }
 0x129   : > { %v351_v42 = vrot.slane %v350_v40, 2  ;;  %v361_v43 = vrot.slane %v360_v41, 4 }
 0x12b   : > { %v362_v44 = vadd.f32 %v361_v43, %v360_v41  ;;  %v352_v45 = vadd.f32 %v351_v42, %v350_v40 }
 0x12d   : > { %v363_v46 = vrot.slane %v362_v44, 2  ;;  %v353_v47 = vrot.slane %v352_v45, 1 }
 0x12f   : > { %v364_v48 = vadd.f32 %v363_v46, %v362_v44  ;;  %v354_v49 = vadd.f32 %v353_v47, %v352_v45 }
 0x131   : > { %592 = vpush %v354_v49  ;;  %v365_v50 = vrot.slane %v364_v48, 1 }
 0x133   : > { %v366_v51 = vadd.f32 %v365_v50, %v364_v48 }
 0x135   : > { %594 = vpush %v366_v51 }
 0x162   : > { %s593_s29 = spop %592 }
 0x163   : > { %v368_v52 = vstv %s593_s29 }
 0x164   : > { %369 = vst [vmem:[%s1156_s28] sm:$0xff] %v368_v52 }
 0x165   : > { %782 = shalt.err (!%p779_p10)
}
 0x166   : > { %s783_s28 = scalar_lea.hbm %s1166_s23, 128  ;;  %s787_s29 = scalar_lea.hbm %s1265_s2, 512 }
 0x167   : > { %p784_p1 = scmp.ne.s32.totalorder %s1166_s23, %s783_s28  ;;  %p788_p3 = scmp.lt.u32.totalorder %s1166_s23, %s1265_s2 }
 0x168   : > { %p789_p11 = scmp.lt.u32.totalorder %s787_s29, %s783_s28  ;;  %p791_p12 = scmp.lt.u32.totalorder %s783_s28, %s1166_s23 }
 0x169   : > { %p785_p9 = pnand %p784_p1, %p1291_p0 }
 0x16a   : > { %p790_p5 = por %p789_p11, %p788_p3 }
 0x16b   : > { %p786_p8 = pneg %p785_p9 }
 0x16c   : > { %p792_p4 = por %p791_p12, %p790_p5 }
 0x16e   : > { %p793_p6 = pnand %p792_p4, %p786_p8 }
 0x170   : > { %796 = shalt.err (!%p793_p6)
}
 0x171   : > { %600 = dma.vmem_to_hbm [thread:$0]  (%p1291_p0), %s1168_s24, 128, %s1166_s23, %s373_s19  }
 0x172   : > { %s595_s30 = spop %594  ;;  %s378_s5 = scalar_lea.sflag [#allocation11], %s1152_s0 }
 0x173   : > { %v370_v53 = vstv %s595_s30  ;;  %s797_s21 = scalar_lea.vmem %s1201_s11, 128  ;;  %s933_s27 = smov [#allocation10]  }
 0x174   : > { %371 = vst [vmem:[%s1158_s4] sm:$0xff] %v370_v53  ;;  %p798_p13 = scmp.ne.s32.totalorder %s1201_s11, %s797_s21  ;;  %s801_s28 = sshll.u32 %s933_s27, 4  ;;  %s802_s28 = int_to_ptr.vmem [resolvable:$false] %s801_s28 }
 0x175   : > { %s803_s26 = scalar_lea.vmem %s802_s28, 256  ;;  %p804_p10 = scmp.lt.s32.totalorder %s1201_s11, %s802_s28 }
 0x176   : > { %p799_p2 = pnand %p798_p13, %p1291_p0  ;;  %p805_p1 = scmp.lt.s32.totalorder %s803_s26, %s797_s21 }
 0x178   : > { %p800_p7 = pneg %p799_p2  ;;  %p806_p9 = por %p805_p1, %p804_p10 }
 0x17a   : > { %p807_p8 = pnand %p806_p9, %p800_p7 }
 0x17c   : > { %810 = shalt.err (!%p807_p8)
}
 0x17d   : > { %s811_s0 = scalar_lea.hbm %s1175_s18, 128  ;;  %s815_s23 = scalar_lea.hbm %s1266_s3, 512 }
 0x17e   : > { %p812_p3 = scmp.ne.s32.totalorder %s1175_s18, %s811_s0  ;;  %p816_p12 = scmp.lt.u32.totalorder %s1175_s18, %s1266_s3 }
 0x17f   : > { %p817_p4 = scmp.lt.u32.totalorder %s815_s23, %s811_s0  ;;  %p819_p13 = scmp.lt.u32.totalorder %s811_s0, %s1175_s18 }
 0x180   : > { %p813_p11 = pnand %p812_p3, %p1291_p0 }
 0x181   : > { %p818_p6 = por %p817_p4, %p816_p12 }
 0x182   : > { %p814_p5 = pneg %p813_p11 }
 0x183   : > { %p820_p2 = por %p819_p13, %p818_p6 }
 0x185   : > { %p821_p7 = pnand %p820_p2, %p814_p5 }
 0x187   : > { %824 = shalt.err (!%p821_p7)
}
 0x188   : > { %601 = dma.vmem_to_hbm [thread:$0]  (%p1291_p0), %s1201_s11, 128, %s1175_s18, %s378_s5  }
 0x189 PF: > { %p619_p10 = scmp.ge.s32.totalorder %s927_s22, 2  ;;  %s420_s29 = sand.u32 1, %s887_s12  }
 0x18a   : > { %p1292_p1 = scmp.ne.s32.totalorder %s1281_s10, 0  ;;  %s421_s6 = scalar_lea.sflag [#allocation6], %s420_s29 }
 0x18c   : > { %p612_p9 = pnand %p619_p10, %p1292_p1 }
 0x18e   : > { %878 = dma.done.wait (!%p612_p9), %s421_s6, 128  }
 0x18f   : > { %880 = vsyncadd (!%p612_p9), %s421_s6, 4294967168  ;;  %s430_s15 = scalar_lea.sflag [#allocation11], %s420_s29 }
 0x190   : > { %882 = dma.done.wait (!%p612_p9), %s430_s15, 128  }
 0x191   : > { %884 = vsyncadd (!%p612_p9), %s430_s15, 4294967168  ;;  %s26_s22 = sadd.s32 1, %s927_s22   ;;  %s1293_s19 = sld [smem:[#allocation16_spill]] }
 0x192   : > { %p23_p8 = scmp.ge.s32.totalorder %s26_s22, 6   ;;  %s1294_s9 = sld [smem:[#allocation17_spill]] }
 0x193   : > { %s1295_s21 = sld [smem:[#allocation18_spill]]  ;;  %s1296_s12 = smov %s891_s13 }
 0x194   : > { %s1297_s13 = smov %s895_s14  ;;  %s1298_s14 = smov %s1042_s8 }
 0x195   : > { %s1299_s15 = smov %s903_s16  ;;  %s1300_s16 = smov %s907_s17 }
 0x196   : > { %s1301_s17 = smov %s1035_s7  ;;  %s1302_s18 = smov %s919_s20 }
 0x197   :  { %25 = sbr.rel (!%p23_p8) target bundleno = 15 (0xf), region = 119 }
 0x198   : > { %s1303_s20 = smov %s1294_s9 }
 0x19e   :  { %435 = vsyncpa [#allocation5], 1 }
 0x19f   :  { %437 = vsyncpa [#allocation5 + $0x1], 1 }
 0x1a0   :  { %438 = vsyncpa [#allocation8], 1 }
 0x1a1   :  { %440 = vsyncpa [#allocation8 + $0x1], 1 }
 0x1a2   :  { %441 = vsyncpa [#allocation6], 1 }
 0x1a3   :  { %443 = vsyncpa [#allocation6 + $0x1], 1 }
 0x1a4   :  { %444 = vsyncpa [#allocation11], 1 }
 0x1a5   :  { %446 = vsyncpa [#allocation11 + $0x1], 1 }

</bundles_post_ra>
